<compile_context>
chip_gen: v7x
topology: tpu7x:2x2x1
jax: 0.10.0
libtpu: 0.0.40
codegen_flags: <defaults>
</compile_context>

<pallas_src>
import jax
import jax.numpy as jnp
from jax.experimental import pallas as pl
from jax.experimental.pallas import tpu as pltpu

HIDDEN = 16          # fixed by the module (lin1 -> 16)
AUG = HIDDEN + 1     # features + trailing ones column (denominator / stabilizer)


def _device_config():
    # v7x: 64 MiB physical VMEM, 2 TensorCores -> keep TILE=128 (more grid steps
    # for megacore balance) and a conservative scoped-VMEM limit.
    # v5e/v6e (128 MiB VMEM): TILE=256 doubles the MXU M dim and halves per-step
    # overhead; raise the scoped-VMEM limit well above v5e's 16 MiB default.
    try:
        kind = jax.devices()[0].device_kind.lower()
    except Exception:
        kind = ""
    if "v7" in kind:
        return 128, 32 * 1024 * 1024
    return 256, 64 * 1024 * 1024


TILE, _VMEM_LIMIT = _device_config()

_COMPILER_PARAMS = pltpu.CompilerParams(
    dimension_semantics=("parallel",),     # row tiles independent -> v7x megacore
    vmem_limit_bytes=_VMEM_LIMIT,
)


def _normalize_rows(h):
    # F.normalize(h, p=2, dim=-1) with eps clamp; rsqrt uses the EUP slot
    # instead of a VALU divide.  (max(sqrt(sq),1e-12) == sqrt(max(sq,1e-24)))
    sq = jnp.sum(h * h, axis=-1, keepdims=True)
    return h * jax.lax.rsqrt(jnp.maximum(sq, 1e-24))


def _attention_aggregate(beta, adj_tile_i8, hnq_tile, hn_aug_full, h_aug_full):
    """One AGNNConv propagation for a TILE of target rows vs all N sources.

    alpha[i, j] = softmax_j( beta * cos(h_i, h_j) ) over edges j -> i
    out_i       = sum_j alpha[i, j] * h_j

    hnq_tile    : [TILE, 17] bf16, rows [hn_i, 1] of the current tile
    hn_aug_full : [N, 17]   bf16, rows [hn_j, 1]      (keys)
    h_aug_full  : [N, 17]   bf16, rows [h_j, 1]       (values + denom column)
    """
    # Fold beta and the static stabilizer -|beta| into the query tile
    # ([TILE,17] op): query_i = [beta*hn_i, -|beta|], key_j = [hn_j, 1], so the
    # MXU directly emits logits[i,j] = beta*cos(i,j) - |beta| <= 0 (exp-ready;
    # |beta|, not beta: prop2's beta is learnable and may go negative).
    col = jax.lax.broadcasted_iota(jnp.int32, (1, AUG), 1)
    scale = jnp.where(col < HIDDEN, beta, -jnp.abs(beta))
    q = (hnq_tile.astype(jnp.float32) * scale).astype(jnp.bfloat16)   # [TILE,17]
    logits = jax.lax.dot_general(
        q, hn_aug_full, (((1,), (1,)), ((), ())),
        preferred_element_type=jnp.float32)                           # [TILE, N]
    # exp in f32 (exact; v5e EUP has no bf16), mask multiply in bf16 (2x VALU
    # rate on v6e/v7x, half-size temporary, MXU-ready).  Masked entries -> 0.
    p = jnp.exp(logits).astype(jnp.bfloat16) * adj_tile_i8.astype(jnp.bfloat16)
    # One MXU pass computes both the weighted source-feature sum and the
    # softmax denominator (trailing ones column of h_aug_full).
    raw = jax.lax.dot_general(
        p, h_aug_full, (((1,), (0,)), ((), ())),
        preferred_element_type=jnp.float32)                           # [TILE, 17]
    # Clamp keeps padded (edge-less) rows finite: p == 0 there -> output 0.
    denom = jnp.maximum(raw[:, HIDDEN:HIDDEN + 1], 1e-12)
    return raw[:, :HIDDEN] * pl.reciprocal(denom, approx=True)        # [TILE, 16]


def _write_aug(ref, vals):
    # Store [TILE, 16] features plus the trailing ones column into a [TILE, 17]
    # bf16 output block.
    ref[:, :HIDDEN] = vals.astype(jnp.bfloat16)
    ref[:, HIDDEN:] = jnp.ones((vals.shape[0], 1), jnp.bfloat16)


# ---------------------------------------------------------------------------
# Pass A: h1 = relu(lin1(x)); emit augmented [h1, 1] and normalized [hn1, 1].
# ---------------------------------------------------------------------------
def _lin1_kernel(x_ref, w1_ref, b1_ref, hn_aug_ref, h_aug_ref):
    h = jnp.dot(x_ref[...], w1_ref[...],
                preferred_element_type=jnp.float32) + b1_ref[...]
    h = jnp.maximum(h, 0.0)                                           # [TILE, 16]
    _write_aug(h_aug_ref, h)
    _write_aug(hn_aug_ref, _normalize_rows(h))


# ---------------------------------------------------------------------------
# Pass B: prop1 over a streamed adjacency row tile; emits augmented h2 / hn2.
# ---------------------------------------------------------------------------
def _prop_kernel(beta_ref, adj_ref, hnq_ref, hn_aug_full_ref, h_aug_full_ref,
                 out_hn_aug_ref, out_h_aug_ref):
    agg = _attention_aggregate(beta_ref[0], adj_ref[...], hnq_ref[...],
                               hn_aug_full_ref[...], h_aug_full_ref[...])
    _write_aug(out_h_aug_ref, agg)
    _write_aug(out_hn_aug_ref, _normalize_rows(agg))


# ---------------------------------------------------------------------------
# Pass C: prop2 over a streamed adjacency row tile, fused with lin2 and
# log_softmax.
# ---------------------------------------------------------------------------
def _prop_lin2_kernel(beta_ref, adj_ref, hnq_ref, hn_aug_full_ref,
                      h_aug_full_ref, w2_ref, b2_ref, out_ref):
    agg = _attention_aggregate(beta_ref[0], adj_ref[...], hnq_ref[...],
                               hn_aug_full_ref[...], h_aug_full_ref[...])
    logits = jnp.dot(agg, w2_ref[...],
                     preferred_element_type=jnp.float32) + b2_ref[...]
    m = jnp.max(logits, axis=-1, keepdims=True)
    lse = m + jnp.log(jnp.sum(jnp.exp(logits - m), axis=-1, keepdims=True))
    out_ref[...] = logits - lse


def prepare_adjacency(adj):
    """One-time per graph: dense adjacency (any dtype) -> padded {0,1} int8 mask.

    Do this outside the per-step forward so no N^2 conversion / padding array is
    re-materialized in HBM on every call.
    """
    n = adj.shape[0]
    n_pad = pl.cdiv(n, TILE) * TILE
    m = (adj != 0).astype(jnp.int8)
    if n_pad != n:
        m = jnp.pad(m, ((0, n_pad - n), (0, n_pad - n)))
    return m


def agnn_net(x, adj_i8, w1, b1, w2, b2, beta1, beta2):
    n, f = x.shape
    c = w2.shape[1]
    n_pad = adj_i8.shape[0]
    assert w1.shape[1] == HIDDEN
    assert adj_i8.dtype == jnp.int8 and adj_i8.shape == (n_pad, n_pad)
    assert n_pad % TILE == 0 and n_pad >= n
    grid = (n_pad // TILE,)

    # Pad node rows to a multiple of TILE; padded rows have no edges, so they
    # aggregate to exactly zero and are sliced off at the end.
    if n_pad != n:
        x = jnp.pad(x, ((0, n_pad - n), (0, 0)))

    adj_spec = pl.BlockSpec((TILE, n_pad), lambda i: (i, 0))       # streamed
    row_aug = pl.BlockSpec((TILE, AUG), lambda i: (i, 0))          # per-tile rows
    res_aug = pl.BlockSpec((n_pad, AUG), lambda i: (0, 0))         # VMEM-resident
    smem_scalar = pl.BlockSpec(memory_space=pltpu.MemorySpace.SMEM)
    aug_shape = jax.ShapeDtypeStruct((n_pad, AUG), jnp.bfloat16)

    # --- pass A: lin1 + relu (+ normalization, ones columns) ----------------
    hn1, h1 = pl.pallas_call(
        _lin1_kernel,
        grid=grid,
        in_specs=[
            pl.BlockSpec((TILE, f), lambda i: (i, 0)),
            pl.BlockSpec((f, HIDDEN), lambda i: (0, 0)),
            pl.BlockSpec((1, HIDDEN), lambda i: (0, 0)),
        ],
        out_specs=(row_aug, row_aug),
        out_shape=(aug_shape, aug_shape),
        compiler_params=_COMPILER_PARAMS,
    )(x, w1, b1)

    # --- pass B: prop1 (adj streamed once) ----------------------------------
    hn2, h2 = pl.pallas_call(
        _prop_kernel,
        grid=grid,
        in_specs=[smem_scalar, adj_spec, row_aug, res_aug, res_aug],
        out_specs=(row_aug, row_aug),
        out_shape=(aug_shape, aug_shape),
        compiler_params=_COMPILER_PARAMS,
    )(beta1, adj_i8, hn1, hn1, h1)

    # --- pass C: prop2 + lin2 + log_softmax (adj streamed once more) --------
    out = pl.pallas_call(
        _prop_lin2_kernel,
        grid=grid,
        in_specs=[smem_scalar, adj_spec, row_aug, res_aug, res_aug,
                  pl.BlockSpec((HIDDEN, c), lambda i: (0, 0)),
                  pl.BlockSpec((1, c), lambda i: (0, 0))],
        out_specs=pl.BlockSpec((TILE, c), lambda i: (i, 0)),
        out_shape=jax.ShapeDtypeStruct((n_pad, c), jnp.float32),
        compiler_params=_COMPILER_PARAMS,
    )(beta2, adj_i8, hn2, hn2, h2, w2, b2)

    return out[:n]


if __name__ == "__main__":
    # Small synthetic problem consistent with the module:
    #   num_features = 32, hidden = 16 (fixed by lin1), num_classes = 7,
    #   N = 200 nodes (exercises row padding and the streamed-adjacency grid).
    N, F_IN, C = 200, 32, 7

    key = jax.random.PRNGKey(0)
    k_x, k_adj, k_w1, k_b1, k_w2, k_b2 = jax.random.split(key, 6)

    x = jax.random.normal(k_x, (N, F_IN), dtype=jnp.float32)

    # Random sparse directed graph as a dense mask + self-loops
    # (AGNNConv adds self-loops by default).
    adj = jax.random.bernoulli(k_adj, p=0.1, shape=(N, N)).astype(jnp.float32)
    adj = jnp.clip(adj + jnp.eye(N, dtype=jnp.float32), 0.0, 1.0)

    w1 = jax.random.normal(k_w1, (F_IN, HIDDEN), jnp.float32) / jnp.sqrt(F_IN)
    b1 = jax.random.normal(k_b1, (1, HIDDEN), jnp.float32) * 0.01
    w2 = jax.random.normal(k_w2, (HIDDEN, C), jnp.float32) / jnp.sqrt(HIDDEN)
    b2 = jax.random.normal(k_b2, (1, C), jnp.float32) * 0.01
    beta1 = jnp.ones((1,), jnp.float32)   # prop1: requires_grad=False, beta = 1
    beta2 = jnp.ones((1,), jnp.float32)   # prop2: learnable, init = 1

    # One-time graph preprocessing (outside the forward path).
    adj_i8 = jax.block_until_ready(prepare_adjacency(adj))

    out = jax.block_until_ready(agnn_net(x, adj_i8, w1, b1, w2, b2, beta1, beta2))

    assert out.shape == (N, C)
    assert bool(jnp.all(jnp.isfinite(out)))
    # log_softmax rows should sum to 1 in probability space.
    assert bool(jnp.allclose(jnp.sum(jnp.exp(out), axis=1), 1.0, atol=1e-4))

    # Pure-JAX f32 reference. Loose tolerance: the kernel runs the N^2-scale
    # matmuls and the masked exp weights in bf16 (f32 MXU accumulation) and
    # uses an approximate reciprocal for the attention normalization.
    def ref_forward(x, adj, w1, b1, w2, b2, b1_beta, b2_beta):
        def prop(h, beta):
            hn = h / jnp.maximum(
                jnp.linalg.norm(h, axis=-1, keepdims=True), 1e-12)
            s = hn @ hn.T
            logits = jnp.where(adj > 0, beta * s, -jnp.inf)
            alpha = jax.nn.softmax(logits, axis=-1)
            return alpha @ h

        h = jnp.maximum(x @ w1 + b1, 0.0)
        h = prop(h, b1_beta[0])
        h = prop(h, b2_beta[0])
        return jax.nn.log_softmax(h @ w2 + b2, axis=-1)

    ref = ref_forward(x, adj, w1, b1, w2, b2, beta1, beta2)
    max_err = float(jnp.max(jnp.abs(out - ref)))
    assert max_err < 0.2, max_err

    print("KERNEL_OK")
</pallas_src>

<mosaic_0001>
module attributes {stable_mosaic.version = 11 : i64} {
  func.func @_lin1_kernel(%arg0: i32, %arg1: memref<256x32xf32, #tpu.memory_space<vmem>>, %arg2: memref<32x16xf32, #tpu.memory_space<vmem>>, %arg3: memref<1x16xf32, #tpu.memory_space<vmem>>, %arg4: memref<256x17xbf16, #tpu.memory_space<vmem>>, %arg5: memref<256x17xbf16, #tpu.memory_space<vmem>>) attributes {dimension_semantics = [#tpu.dimension_semantics<parallel>], iteration_bounds = array<i64: 1>, scalar_prefetch = 0 : i64, scratch_operands = 0 : i64, tpu.core_type = #tpu.core_type<tc>, window_params = [{transform_indices = @transform_0, window_bounds = array<i64: 256, 32>}, {pipeline_mode = #tpu.pipeline_mode<synchronous>, transform_indices = @transform_1, window_bounds = array<i64: 32, 16>}, {pipeline_mode = #tpu.pipeline_mode<synchronous>, transform_indices = @transform_2, window_bounds = array<i64: 1, 16>}, {transform_indices = @transform_3, window_bounds = array<i64: 256, 17>}, {transform_indices = @transform_4, window_bounds = array<i64: 256, 17>}]} {
    %c0 = arith.constant 0 : index
    %c0_0 = arith.constant 0 : index
    %0 = vector.load %arg1[%c0, %c0_0] : memref<256x32xf32, #tpu.memory_space<vmem>>, vector<256x32xf32>
    %c0_1 = arith.constant 0 : index
    %c0_2 = arith.constant 0 : index
    %1 = vector.load %arg2[%c0_1, %c0_2] : memref<32x16xf32, #tpu.memory_space<vmem>>, vector<32x16xf32>
    %cst = arith.constant dense<0.000000e+00> : vector<256x16xf32>
    %2 = tpu.matmul %0, %1, %cst {dimension_numbers = #tpu.dot_dimension_numbers<[1], [0], [0], [1], [0, 0, 1, 1], [], []>} : vector<256x32xf32>, vector<32x16xf32>, vector<256x16xf32> -> vector<256x16xf32>
    %c0_3 = arith.constant 0 : index
    %c0_4 = arith.constant 0 : index
    %3 = vector.load %arg3[%c0_3, %c0_4] : memref<1x16xf32, #tpu.memory_space<vmem>>, vector<1x16xf32>
    %4 = vector.broadcast %3 : vector<1x16xf32> to vector<256x16xf32>
    %5 = arith.addf %2, %4 : vector<256x16xf32>
    %cst_5 = arith.constant 0.000000e+00 : f32
    %6 = vector.broadcast %cst_5 : f32 to vector<256x16xf32>
    %7 = arith.maximumf %5, %6 : vector<256x16xf32>
    %8 = arith.truncf %7 : vector<256x16xf32> to vector<256x16xbf16>
    %c0_6 = arith.constant 0 : index
    %c0_7 = arith.constant 0 : index
    %9 = vector.load %arg5[%c0_6, %c0_7] : memref<256x17xbf16, #tpu.memory_space<vmem>>, vector<256x16xbf16>
    tpu.vector_store %arg5[%c0_6, %c0_7], %8 {strides = array<i32>} : memref<256x17xbf16, #tpu.memory_space<vmem>>, vector<256x16xbf16>,
    %cst_8 = arith.constant 1.000000e+00 : bf16
    %10 = vector.broadcast %cst_8 : bf16 to vector<256x1xbf16>
    %c0_9 = arith.constant 0 : index
    %c16 = arith.constant 16 : index
    %11 = vector.load %arg5[%c0_9, %c16] : memref<256x17xbf16, #tpu.memory_space<vmem>>, vector<256x1xbf16>
    tpu.vector_store %arg5[%c0_9, %c16], %10 {strides = array<i32>} : memref<256x17xbf16, #tpu.memory_space<vmem>>, vector<256x1xbf16>,
    %12 = arith.mulf %7, %7 : vector<256x16xf32>
    %cst_10 = arith.constant dense<0.000000e+00> : vector<256xf32>
    %13 = vector.multi_reduction <add>, %12, %cst_10 [1] : vector<256x16xf32> to vector<256xf32>
    %14 = vector.shape_cast %13 : vector<256xf32> to vector<256x1xf32>
    %cst_11 = arith.constant 1.000000e-24 : f32
    %15 = vector.broadcast %cst_11 : f32 to vector<256x1xf32>
    %16 = arith.maximumf %14, %15 : vector<256x1xf32>
    %17 = math.rsqrt %16 : vector<256x1xf32>
    %18 = vector.broadcast %17 : vector<256x1xf32> to vector<256x16xf32>
    %19 = arith.mulf %7, %18 : vector<256x16xf32>
    %20 = arith.truncf %19 : vector<256x16xf32> to vector<256x16xbf16>
    %c0_12 = arith.constant 0 : index
    %c0_13 = arith.constant 0 : index
    %21 = vector.load %arg4[%c0_12, %c0_13] : memref<256x17xbf16, #tpu.memory_space<vmem>>, vector<256x16xbf16>
    tpu.vector_store %arg4[%c0_12, %c0_13], %20 {strides = array<i32>} : memref<256x17xbf16, #tpu.memory_space<vmem>>, vector<256x16xbf16>,
    %cst_14 = arith.constant 1.000000e+00 : bf16
    %22 = vector.broadcast %cst_14 : bf16 to vector<256x1xbf16>
    %c0_15 = arith.constant 0 : index
    %c16_16 = arith.constant 16 : index
    %23 = vector.load %arg4[%c0_15, %c16_16] : memref<256x17xbf16, #tpu.memory_space<vmem>>, vector<256x1xbf16>
    tpu.vector_store %arg4[%c0_15, %c16_16], %22 {strides = array<i32>} : memref<256x17xbf16, #tpu.memory_space<vmem>>, vector<256x1xbf16>,
    return
  }
  func.func @transform_0(%arg0: i32) -> (i32, i32) {
    %c0_i32 = arith.constant 0 : i32
    %c0_i32_0 = arith.constant 0 : i32
    return %arg0, %c0_i32 : i32, i32
  }
  func.func @transform_1(%arg0: i32) -> (i32, i32) {
    %c0_i32 = arith.constant 0 : i32
    %c0_i32_0 = arith.constant 0 : i32
    %c0_i32_1 = arith.constant 0 : i32
    return %c0_i32, %c0_i32_0 : i32, i32
  }
  func.func @transform_2(%arg0: i32) -> (i32, i32) {
    %c0_i32 = arith.constant 0 : i32
    %c0_i32_0 = arith.constant 0 : i32
    %c0_i32_1 = arith.constant 0 : i32
    return %c0_i32, %c0_i32_0 : i32, i32
  }
  func.func @transform_3(%arg0: i32) -> (i32, i32) {
    %c0_i32 = arith.constant 0 : i32
    %c0_i32_0 = arith.constant 0 : i32
    return %arg0, %c0_i32 : i32, i32
  }
  func.func @transform_4(%arg0: i32) -> (i32, i32) {
    %c0_i32 = arith.constant 0 : i32
    %c0_i32_0 = arith.constant 0 : i32
    return %arg0, %c0_i32 : i32, i32
  }
}

</mosaic_0001>

<bundles_post_ra>
// kernel: tpu_custom_call.1
= control target key start
LH: loop header
LB: loop body
LE: loop exit
PB: predicated region body
PF: predicated region fallthrough
CT: control target
= control target key end

     0   :  { %10 = vsyncpa [#allocation3], 0  ;;  %s2179_s0 = inlined_call_operand.hbm [shape: f32[256,32], index: 0, kind: input, shape index: {}]   ;;  %s2180_s1 = inlined_call_operand.hbm [shape: f32[32,16], index: 1, kind: input, shape index: {}]   ;;  %s2181_s2 = inlined_call_operand.hbm [shape: f32[1,16], index: 2, kind: input, shape index: {}]   ;;  %s2182_s3 = inlined_call_operand.hbm [shape: bf16[256,17], index: 3, kind: output, shape index: {0}]   ;;  %s2183_s4 = inlined_call_operand.hbm [shape: bf16[256,17], index: 4, kind: output, shape index: {1}]  }
   0x1   :  { %11 = vsyncpa [#allocation6], 0 }
   0x2   :  { %12 = vsyncpa [#allocation4], 0 }
   0x3   :  { %13 = vsyncpa [#allocation10], 0  ;;  %s1557_s15 = smov [#allocation5]   ;;  %s1558_s17 = smov [#allocation2]  }
   0x4   :  { %s31_s16 = sshll.u32 %s1557_s15, 4  ;;  %s19_s18 = sshll.u32 %s1558_s17, 4  ;;  %s32_s16 = int_to_ptr.vmem [resolvable:$true] %s31_s16  ;;  %s1592_s18 = int_to_ptr.vmem [resolvable:$true] %s19_s18 }
   0x5   :  { %s1439_s21 = scalar_lea.hbm %s2180_s1, 512 }
   0x6   :  { %p1440_p0 = scmp.ne.s32.totalorder %s2180_s1, %s1439_s21  ;;  %p1443_p1 = scmp.lt.u32.totalorder %s1439_s21, %s2180_s1 }
   0x8   :  { %p1445_p2 = pnand %p1443_p1, %p1440_p0 }
   0xa   :  { %1448 = shalt.err (!%p1445_p2)
}
   0xb   :  { %s1449_s26 = scalar_lea.vmem %s32_s16, 512  ;;  %p1454_p4 = scmp.lt.s32.totalorder %s32_s16, %s32_s16 }
   0xc   :  { %p1450_p3 = scmp.ne.s32.totalorder %s32_s16, %s1449_s26  ;;  %p1455_p5 = scmp.lt.s32.totalorder %s1449_s26, %s1449_s26 }
   0xe   :  { %p1456_p6 = por %p1455_p5, %p1454_p4 }
  0x10   :  { %p1457_p7 = pnand %p1456_p6, %p1450_p3 }
  0x12   :  { %1460 = shalt.err (!%p1457_p7)
}
  0x13   :  { %s1559_s27 = smov 128   ;;  %s1560_s28 = smov 8  }
  0x14   :  { %37 = dma.hbm_to_vmem [thread:$0]  %s2180_s1, 512, %s32_s16, [#allocation6], %s1559_s27, %s1559_s27, %s1560_s28  }
  0x15   :  { %s1461_s7 = scalar_lea.hbm %s2179_s0, 4096 }
  0x16   :  { %p1462_p8 = scmp.ne.s32.totalorder %s2179_s0, %s1461_s7  ;;  %p1465_p9 = scmp.lt.u32.totalorder %s1461_s7, %s2179_s0 }
  0x18   :  { %p1467_p10 = pnand %p1465_p9, %p1462_p8 }
  0x1a   :  { %1470 = shalt.err (!%p1467_p10)
}
  0x1b   :  { %s1471_s12 = scalar_lea.vmem %s1592_s18, 4096  ;;  %p1476_p12 = scmp.lt.s32.totalorder %s1592_s18, %s1592_s18 }
  0x1c   :  { %p1472_p11 = scmp.ne.s32.totalorder %s1592_s18, %s1471_s12  ;;  %p1477_p13 = scmp.lt.s32.totalorder %s1471_s12, %s1471_s12 }
  0x1e   :  { %p1478_p0 = por %p1477_p13, %p1476_p12 }
  0x20   :  { %p1479_p1 = pnand %p1478_p0, %p1472_p11 }
  0x22   :  { %1482 = shalt.err (!%p1479_p1)
}
  0x23   :  { %25 = dma.hbm_to_vmem [thread:$0]  %s2179_s0, 4096, %s1592_s18, [#allocation3], %s1559_s27, %s1559_s27, %s1560_s28  }
  0x24   :  { %s1561_s14 = smov [#allocation7]   ;;  %s1483_s19 = scalar_lea.hbm %s2181_s2, 16 }
  0x25   :  { %s44_s15 = sshll.u32 %s1561_s14, 4  ;;  %p1484_p2 = scmp.ne.s32.totalorder %s2181_s2, %s1483_s19  ;;  %s45_s15 = int_to_ptr.vmem [resolvable:$true] %s44_s15 }
  0x26   :  { %p1487_p3 = scmp.lt.u32.totalorder %s1483_s19, %s2181_s2 }
  0x28   :  { %p1489_p4 = pnand %p1487_p3, %p1484_p2 }
  0x2a   :  { %1492 = shalt.err (!%p1489_p4)
}
  0x2b   :  { %s1493_s24 = scalar_lea.vmem %s45_s15, 16  ;;  %s1497_s0 = scalar_lea.vmem %s45_s15, 32 }
  0x2c   :  { %p1494_p5 = scmp.ne.s32.totalorder %s45_s15, %s1493_s24  ;;  %p1498_p6 = scmp.lt.s32.totalorder %s45_s15, %s45_s15 }
  0x2d   :  { %p1499_p7 = scmp.lt.s32.totalorder %s1497_s0, %s1493_s24 }
  0x2f   :  { %p1500_p8 = por %p1499_p7, %p1498_p6 }
  0x31   :  { %p1501_p9 = pnand %p1500_p8, %p1494_p5 }
  0x33   :  { %1504 = shalt.err (!%p1501_p9)
}
  0x34   :  { %47 = dma.hbm_to_vmem [thread:$0]  %s2181_s2, 16, %s45_s15, [#allocation6]  }
  0x35   :  { %1549 = dma.done.wait [#allocation3], 4096  }
  0x36   :  { %1550 = vsyncadd [#allocation3], 4294963200 }
  0x37   :  { %1551 = dma.done.wait [#allocation6], 528  }
  0x38   :  { %1552 = vsyncadd [#allocation6], 4294966768  ;;  %vm101_vm0 = vcmask 261120   ;;  %v90_v0 = vld [vmem:[#allocation5] sm:$0xff]  ;;  %v91_v1 = vld [vmem:[#allocation5 + $0x8] sm:$0xff]  ;;  %vm583_vm1 = vcmask 125952  }
  0x39   :  { %v92_v2 = vld [vmem:[#allocation5 + $0x10] sm:$0xff]  ;;  %v1353_v3 = vpack.c.bf16 %v91_v1, %v90_v0  ;;  %v93_v4 = vld [vmem:[#allocation5 + $0x18] sm:$0xff]  ;;  %v58_v5 = vld [vmem:[#allocation2] sm:$0xff]  ;;  %vm616_vm2 = vcmask 134272   ;;  %vm681_vm3 = vcmask 130048   ;;  %s1563_s2 = smov [#allocation9]  }
  0x3a   :  { %v74_v6 = vld [vmem:[#allocation2 + $0x80] sm:$0xff]  ;;  %v1357_v7 = vpack.c.bf16 %v93_v4, %v92_v2  ;;  %1305 = vmatprep.mubr.msk.f32.mxu0 %vm101_vm0, %v58_v5  ;;  %v59_v8 = vld [vmem:[#allocation2 + $0x8] sm:$0xff]  ;;  %v60_v10 = vld [vmem:[#allocation2 + $0x10] sm:$0xff]  ;;  %s1083_s26 = sshll.u32 %s1563_s2, 4  ;;  %s1084_s26 = int_to_ptr.vmem [resolvable:$true] %s1083_s26 }
  0x3b   :  { %1329 = vmatprep.mubr.msk.f32.mxu1 %vm101_vm0, %v74_v6  ;;  %1354 = vmatprep.subr.bf16.mxu0 %v1353_v3  ;;  %v75_v9 = vld [vmem:[#allocation2 + $0x88] sm:$0xff]  ;;  %v76_v11 = vld [vmem:[#allocation2 + $0x90] sm:$0xff]  ;;  %v61_v12 = vld [vmem:[#allocation2 + $0x18] sm:$0xff]  ;;  %s1505_s27 = scalar_lea.vmem %s1084_s26, 2048  ;;  %p1510_p11 = scmp.lt.s32.totalorder %s1084_s26, %s1084_s26 }
  0x3c   :  { %1361 = vmatprep.subr.bf16.mxu1 %v1353_v3  ;;  %1356 = vmatpush3.bf16.msra.mxu0 %v1353_v3  ;;  %v77_v13 = vld [vmem:[#allocation2 + $0x98] sm:$0xff]  ;;  %v62_v14 = vld [vmem:[#allocation2 + $0x20] sm:$0xff]  ;;  %v63_v16 = vld [vmem:[#allocation2 + $0x28] sm:$0xff]  ;;  %p1506_p10 = scmp.ne.s32.totalorder %s1084_s26, %s1505_s27  ;;  %p1511_p12 = scmp.lt.s32.totalorder %s1505_s27, %s1505_s27 }
  0x3d   :  { %1363 = vmatpush3.bf16.msra.mxu1 %v1353_v3  ;;  %1358 = vmatprep.subr.bf16.mxu0 %v1357_v7  ;;  %v78_v15 = vld [vmem:[#allocation2 + $0xa0] sm:$0xff]  ;;  %v79_v17 = vld [vmem:[#allocation2 + $0xa8] sm:$0xff]  ;;  %v64_v18 = vld [vmem:[#allocation2 + $0x30] sm:$0xff]  ;;  %v1562_v3 = vmov 1065369472  }
  0x3e   :  { %1362 = vmatprep.subr.bf16.mxu1 %v1357_v7  ;;  %v80_v19 = vld [vmem:[#allocation2 + $0xb0] sm:$0xff]  ;;  %v65_v20 = vld [vmem:[#allocation2 + $0x38] sm:$0xff]  ;;  %v66_v22 = vld [vmem:[#allocation2 + $0x40] sm:$0xff]  ;;  %p1512_p13 = por %p1511_p12, %p1510_p11 }
  0x3f   :  { %v81_v21 = vld [vmem:[#allocation2 + $0xb8] sm:$0xff]  ;;  %v82_v23 = vld [vmem:[#allocation2 + $0xc0] sm:$0xff]  ;;  %v67_v24 = vld [vmem:[#allocation2 + $0x48] sm:$0xff] }
  0x40   :  { %1360 = vmatpush3.bf16.msra.mxu0 %v1357_v7  ;;  %v83_v25 = vld [vmem:[#allocation2 + $0xc8] sm:$0xff]  ;;  %v68_v26 = vld [vmem:[#allocation2 + $0x50] sm:$0xff]  ;;  %v69_v28 = vld [vmem:[#allocation2 + $0x58] sm:$0xff]  ;;  %p1513_p0 = pnand %p1512_p13, %p1506_p10 }
  0x41   :  { %1364 = vmatpush3.bf16.msra.mxu1 %v1357_v7  ;;  %v84_v27 = vld [vmem:[#allocation2 + $0xd0] sm:$0xff]  ;;  %v85_v29 = vld [vmem:[#allocation2 + $0xd8] sm:$0xff]  ;;  %v70_v30 = vld [vmem:[#allocation2 + $0x60] sm:$0xff] }
  0x42   :  { %v86_v31 = vld [vmem:[#allocation2 + $0xe0] sm:$0xff]  ;;  %v71_v32 = vld [vmem:[#allocation2 + $0x68] sm:$0xff]  ;;  %v72_v34 = vld [vmem:[#allocation2 + $0x70] sm:$0xff] }
  0x43   :  { %1306 = vmatmul.mubr.msk.f32.vlgmr.msra.gmra.mrb[0].mxu0 %vm101_vm0, %v59_v8  ;;  %v87_v33 = vld [vmem:[#allocation2 + $0xe8] sm:$0xff]  ;;  %v88_v35 = vld [vmem:[#allocation2 + $0xf0] sm:$0xff]  ;;  %v73_v36 = vld [vmem:[#allocation2 + $0x78] sm:$0xff] }
  0x44   :  { %1330 = vmatmul.mubr.msk.f32.vlgmr.msra.gmra.mrb[0].mxu1 %vm101_vm0, %v75_v9  ;;  %1308 = vmatprep.mubr.msk.f32.mxu0 %vm101_vm0, %v60_v10  ;;  %v89_v37 = vld [vmem:[#allocation2 + $0xf8] sm:$0xff]  ;;  %v1667_v38 = vld [vmem:[#allocation7] ss:$0 sm:$0xff] }
  0x45   :  { %1332 = vmatprep.mubr.msk.f32.mxu1 %vm101_vm0, %v76_v11 }
  0x47   :  { %1309 = vmatmul.mubr.msk.f32.gmra.mrb[2].mxu0 %vm101_vm0, %v61_v12 }
  0x48   :  { %1333 = vmatmul.mubr.msk.f32.gmra.mrb[2].mxu1 %vm101_vm0, %v77_v13  ;;  %1311 = vmatprep.mubr.msk.f32.mxu0 %vm101_vm0, %v62_v14 }
  0x49   :  { %1335 = vmatprep.mubr.msk.f32.mxu1 %vm101_vm0, %v78_v15 }
  0x4b   :  { %1312 = vmatmul.mubr.msk.f32.gmra.mrb[4].mxu0 %vm101_vm0, %v63_v16 }
  0x4c   :  { %1336 = vmatmul.mubr.msk.f32.gmra.mrb[4].mxu1 %vm101_vm0, %v79_v17  ;;  %1314 = vmatprep.mubr.msk.f32.mxu0 %vm101_vm0, %v64_v18 }
  0x4d   :  { %1338 = vmatprep.mubr.msk.f32.mxu1 %vm101_vm0, %v80_v19 }
  0x4f   :  { %1315 = vmatmul.mubr.msk.f32.gmra.mrb[6].mxu0 %vm101_vm0, %v65_v20 }
  0x50   :  { %1339 = vmatmul.mubr.msk.f32.gmra.mrb[6].mxu1 %vm101_vm0, %v81_v21  ;;  %1317 = vmatprep.mubr.msk.f32.mxu0 %vm101_vm0, %v66_v22 }
  0x51   :  { %1341 = vmatprep.mubr.msk.f32.mxu1 %vm101_vm0, %v82_v23 }
  0x53   :  { %1318 = vmatmul.mubr.msk.f32.gmra.mrb[8].mxu0 %vm101_vm0, %v67_v24 }
  0x54   :  { %1342 = vmatmul.mubr.msk.f32.gmra.mrb[8].mxu1 %vm101_vm0, %v83_v25  ;;  %1320 = vmatprep.mubr.msk.f32.mxu0 %vm101_vm0, %v68_v26 }
  0x55   :  { %1344 = vmatprep.mubr.msk.f32.mxu1 %vm101_vm0, %v84_v27 }
  0x57   :  { %1321 = vmatmul.mubr.msk.f32.gmra.mrb[10].mxu0 %vm101_vm0, %v69_v28 }
  0x58   :  { %1345 = vmatmul.mubr.msk.f32.gmra.mrb[10].mxu1 %vm101_vm0, %v85_v29  ;;  %1323 = vmatprep.mubr.msk.f32.mxu0 %vm101_vm0, %v70_v30 }
  0x59   :  { %1347 = vmatprep.mubr.msk.f32.mxu1 %vm101_vm0, %v86_v31 }
  0x5b   :  { %1324 = vmatmul.mubr.msk.f32.gmra.mrb[12].mxu0 %vm101_vm0, %v71_v32 }
  0x5c   :  { %1348 = vmatmul.mubr.msk.f32.gmra.mrb[12].mxu1 %vm101_vm0, %v87_v33  ;;  %1326 = vmatprep.mubr.msk.f32.mxu0 %vm101_vm0, %v72_v34 }
  0x5d   :  { %1350 = vmatprep.mubr.msk.f32.mxu1 %vm101_vm0, %v88_v35 }
  0x5f   :  { %1327 = vmatmul.mubr.msk.f32.gmra.mrb[14].mxu0 %vm101_vm0, %v73_v36 }
  0x60   :  { %1351 = vmatmul.mubr.msk.f32.gmra.mrb[14].mxu1 %vm101_vm0, %v89_v37 }
 0x116   :  { %v1307_v39 = vpop.f32.mrb[0].mxu0 }
 0x117   :  { %v1331_v40 = vpop.f32.mrb[0].mxu1  ;;  %v270_v41 = vadd.f32 %v1307_v39, %v1667_v38  ;;  %v264_v43 = vpop.f32.mrb[1].mxu0 }
 0x118   :  { %v350_v42 = vadd.f32 %v1331_v40, %v1667_v38  ;;  %v344_v44 = vpop.f32.mrb[1].mxu1  ;;  %v265_v45 = vadd.f32 %v1667_v38, %v264_v43 }
 0x119   :  { %v345_v46 = vadd.f32 %v1667_v38, %v344_v44  ;;  %v1673_v47 = vmax.f32 %v270_v41, 0.0 }
 0x11a   :  { %v1675_v48 = vmax.f32 %v350_v42, 0.0  ;;  %v1677_v49 = vmax.f32 %v265_v45, 0.0  ;;  %v1310_v51 = vpop.f32.mrb[2].mxu0 }
 0x11b   :  { %v1679_v50 = vmax.f32 %v345_v46, 0.0  ;;  %v1334_v52 = vpop.f32.mrb[2].mxu1  ;;  %v1198_v53 = vpack.c.bf16 %v1673_v47, %v1673_v47  ;;  %v280_v55 = vadd.f32 %v1310_v51, %v1667_v38  ;;  %v274_v56 = vpop.f32.mrb[3].mxu0  ;;  %v650_v2 = vmul.f32 %v1673_v47, %v1673_v47 }
 0x11c   :  { %v1214_v54 = vpack.c.bf16 %v1675_v48, %v1675_v48  ;;  %v360_v57 = vadd.f32 %v1334_v52, %v1667_v38  ;;  %v354_v58 = vpop.f32.mrb[3].mxu1  ;;  %v1197_v59 = vpack.c.bf16 %v1677_v49, %v1677_v49  ;;  %v275_v61 = vadd.f32 %v1667_v38, %v274_v56 }
 0x11d   :  { %v1213_v60 = vpack.c.bf16 %v1679_v50, %v1679_v50  ;;  %v666_v62 = vmul.f32 %v1675_v48, %v1675_v48  ;;  %585 = vst.msk [vmem:[#allocation9 + $0x4] sm:$0xf] %vm583_vm1, %v1198_v53  ;;  %v1696_v63 = vmax.f32 %v280_v55, 0.0  ;;  %v355_v1 = vadd.f32 %v1667_v38, %v354_v58 }
 0x11e   :  { %601 = vst.msk [vmem:[#allocation9 + $0x44] sm:$0xf] %vm583_vm1, %v1214_v54  ;;  %v1698_v0 = vmax.f32 %v360_v57, 0.0  ;;  %584 = vst.msk [vmem:[#allocation9] sm:$0xf] %vm583_vm1, %v1197_v59  ;;  %v1709_v4 = vmax.f32 %v275_v61, 0.0  ;;  %v649_v6 = vmul.f32 %v1677_v49, %v1677_v49  ;;  %v665_v21 = vmul.f32 %v1679_v50, %v1679_v50 }
 0x11f   :  { %618 = vst.msk [vmem:[#allocation9 + $0x4] sm:$0xf] %vm616_vm2, %v1562_v3  ;;  %634 = vst.msk [vmem:[#allocation9 + $0x44] sm:$0xf] %vm616_vm2, %v1562_v3  ;;  %v733_v5 = vsel %vm681_vm3, %v666_v62, 0.0  ;;  %v1313_v7 = vpop.f32.mrb[4].mxu0  ;;  %v1200_v9 = vpack.c.bf16 %v1696_v63, %v1696_v63  ;;  %v652_v16 = vmul.f32 %v1696_v63, %v1696_v63 }
 0x120   :  { %600 = vst.msk [vmem:[#allocation9 + $0x40] sm:$0xf] %vm583_vm1, %v1213_v60  ;;  %v1337_v8 = vpop.f32.mrb[4].mxu1  ;;  %v1216_v10 = vpack.c.bf16 %v1698_v0, %v1698_v0  ;;  %734 = vadd.xlane.f32.xlu1 %v733_v5  ;;  %v1722_v11 = vmax.f32 %v355_v1, 0.0  ;;  %v685_v12 = vsel %vm681_vm3, %v650_v2, 0.0  ;;  %v284_v13 = vpop.f32.mrb[5].mxu0  ;;  %v1199_v15 = vpack.c.bf16 %v1709_v4, %v1709_v4 }
 0x121   :  { %617 = vst.msk [vmem:[#allocation9] sm:$0xf] %vm616_vm2, %v1562_v3  ;;  %633 = vst.msk [vmem:[#allocation9 + $0x40] sm:$0xf] %vm616_vm2, %v1562_v3  ;;  %v364_v14 = vpop.f32.mrb[5].mxu1  ;;  %686 = vadd.xlane.f32.xlu0 %v685_v12  ;;  %v290_v17 = vadd.f32 %v1313_v7, %v1667_v38  ;;  %v285_v19 = vadd.f32 %v1667_v38, %v284_v13  ;;  %v668_v20 = vmul.f32 %v1698_v0, %v1698_v0 }
 0x122   :  { %587 = vst.msk [vmem:[#allocation9 + $0xc] sm:$0xf] %vm583_vm1, %v1200_v9  ;;  %603 = vst.msk [vmem:[#allocation9 + $0x4c] sm:$0xf] %vm583_vm1, %v1216_v10  ;;  %v1215_v18 = vpack.c.bf16 %v1722_v11, %v1722_v11  ;;  %v691_v22 = vsel %vm681_vm3, %v652_v16, 0.0  ;;  %v370_v24 = vadd.f32 %v1337_v8, %v1667_v38  ;;  %v365_v25 = vadd.f32 %v1667_v38, %v364_v14  ;;  %v1316_v26 = vpop.f32.mrb[6].mxu0 }
 0x123   :  { %620 = vst.msk [vmem:[#allocation9 + $0xc] sm:$0xf] %vm616_vm2, %v1562_v3  ;;  %636 = vst.msk [vmem:[#allocation9 + $0x4c] sm:$0xf] %vm616_vm2, %v1562_v3  ;;  %v1745_v23 = vmax.f32 %v290_v17, 0.0  ;;  %v1340_v27 = vpop.f32.mrb[6].mxu1  ;;  %v651_v31 = vmul.f32 %v1709_v4, %v1709_v4  ;;  %v300_v37 = vadd.f32 %v1316_v26, %v1667_v38  ;;  %v667_v40 = vmul.f32 %v1722_v11, %v1722_v11 }
 0x124   :  { %586 = vst.msk [vmem:[#allocation9 + $0x8] sm:$0xf] %vm583_vm1, %v1199_v15  ;;  %602 = vst.msk [vmem:[#allocation9 + $0x48] sm:$0xf] %vm583_vm1, %v1215_v18  ;;  %692 = vadd.xlane.f32.xlu1 %v691_v22  ;;  %v682_v28 = vsel %vm681_vm3, %v649_v6, 0.0  ;;  %v1753_v29 = vmax.f32 %v285_v19, 0.0  ;;  %v380_v54 = vadd.f32 %v1340_v27, %v1667_v38 }
 0x125   :  { %619 = vst.msk [vmem:[#allocation9 + $0x8] sm:$0xf] %vm616_vm2, %v1562_v3  ;;  %v739_v30 = vsel %vm681_vm3, %v668_v20, 0.0  ;;  %v294_v32 = vpop.f32.mrb[7].mxu0  ;;  %v374_v33 = vpop.f32.mrb[7].mxu1  ;;  %683 = vadd.xlane.f32.xlu0 %v682_v28  ;;  %v1202_v34 = vpack.c.bf16 %v1745_v23, %v1745_v23  ;;  %v1762_v35 = vmax.f32 %v370_v24, 0.0  ;;  %v654_v45 = vmul.f32 %v1745_v23, %v1745_v23 }
 0x126   :  { %635 = vst.msk [vmem:[#allocation9 + $0x48] sm:$0xf] %vm616_vm2, %v1562_v3  ;;  %v1764_v36 = vmax.f32 %v365_v25, 0.0  ;;  %v1201_v39 = vpack.c.bf16 %v1753_v29, %v1753_v29  ;;  %v295_v41 = vadd.f32 %v1667_v38, %v294_v32  ;;  %v1777_v44 = vmax.f32 %v300_v37, 0.0  ;;  %v1319_v46 = vpop.f32.mrb[8].mxu0 }
 0x127   :  { %589 = vst.msk [vmem:[#allocation9 + $0x14] sm:$0xf] %vm583_vm1, %v1202_v34  ;;  %v1218_v42 = vpack.c.bf16 %v1762_v35, %v1762_v35  ;;  %v1343_v51 = vpop.f32.mrb[8].mxu1  ;;  %v730_v52 = vsel %vm681_vm3, %v665_v21, 0.0  ;;  %v375_v55 = vadd.f32 %v1667_v38, %v374_v33  ;;  %v304_v56 = vpop.f32.mrb[9].mxu0  ;;  %v688_v58 = vsel %vm681_vm3, %v651_v31, 0.0 }
 0x128   :  { %v1217_v43 = vpack.c.bf16 %v1764_v36, %v1764_v36  ;;  %622 = vst.msk [vmem:[#allocation9 + $0x14] sm:$0xf] %vm616_vm2, %v1562_v3  ;;  %740 = vadd.xlane.f32.xlu1 %v739_v30  ;;  %v1785_v53 = vmax.f32 %v295_v41, 0.0  ;;  %v384_v57 = vpop.f32.mrb[9].mxu1  ;;  %v1204_v59 = vpack.c.bf16 %v1777_v44, %v1777_v44  ;;  %v653_v61 = vmul.f32 %v1753_v29, %v1753_v29 }
 0x129   :  { %588 = vst.msk [vmem:[#allocation9 + $0x10] sm:$0xf] %vm583_vm1, %v1201_v39  ;;  %731 = vadd.xlane.f32.xlu0 %v730_v52  ;;  %605 = vst.msk [vmem:[#allocation9 + $0x54] sm:$0xf] %vm583_vm1, %v1218_v42  ;;  %v1804_v62 = vmax.f32 %v380_v54, 0.0  ;;  %v1806_v1 = vmax.f32 %v375_v55, 0.0  ;;  %v310_v6 = vadd.f32 %v1319_v46, %v1667_v38  ;;  %v305_v7 = vadd.f32 %v1667_v38, %v304_v56 }
 0x12a   :  { %621 = vst.msk [vmem:[#allocation9 + $0x10] sm:$0xf] %vm616_vm2, %v1562_v3  ;;  %638 = vst.msk [vmem:[#allocation9 + $0x54] sm:$0xf] %vm616_vm2, %v1562_v3  ;;  %v1203_v60 = vpack.c.bf16 %v1785_v53, %v1785_v53  ;;  %v736_v2 = vsel %vm681_vm3, %v667_v40, 0.0  ;;  %v697_v5 = vsel %vm681_vm3, %v654_v45, 0.0  ;;  %v670_v13 = vmul.f32 %v1762_v35, %v1762_v35 }
 0x12b   :  { %604 = vst.msk [vmem:[#allocation9 + $0x50] sm:$0xf] %vm583_vm1, %v1217_v43  ;;  %591 = vst.msk [vmem:[#allocation9 + $0x1c] sm:$0xf] %vm583_vm1, %v1204_v59  ;;  %v1322_v8 = vpop.f32.mrb[10].mxu0  ;;  %v1346_v9 = vpop.f32.mrb[10].mxu1  ;;  %v1220_v10 = vpack.c.bf16 %v1804_v62, %v1804_v62  ;;  %v1219_v12 = vpack.c.bf16 %v1806_v1, %v1806_v1  ;;  %v669_v14 = vmul.f32 %v1764_v36, %v1764_v36 }
 0x12c   :  { %637 = vst.msk [vmem:[#allocation9 + $0x50] sm:$0xf] %vm616_vm2, %v1562_v3  ;;  %689 = vadd.xlane.f32.xlu1 %v688_v58  ;;  %624 = vst.msk [vmem:[#allocation9 + $0x1c] sm:$0xf] %vm616_vm2, %v1562_v3  ;;  %v314_v15 = vpop.f32.mrb[11].mxu0  ;;  %v394_v16 = vpop.f32.mrb[11].mxu1  ;;  %v390_v19 = vadd.f32 %v1343_v51, %v1667_v38  ;;  %v385_v20 = vadd.f32 %v1667_v38, %v384_v57  ;;  %v320_v32 = vadd.f32 %v1322_v8, %v1667_v38 }
 0x12d   :  { %590 = vst.msk [vmem:[#allocation9 + $0x18] sm:$0xf] %vm583_vm1, %v1203_v60  ;;  %737 = vadd.xlane.f32.xlu0 %v736_v2  ;;  %v1826_v17 = vmax.f32 %v310_v6, 0.0  ;;  %v1828_v18 = vmax.f32 %v305_v7, 0.0  ;;  %v694_v21 = vsel %vm681_vm3, %v653_v61, 0.0  ;;  %v745_v30 = vsel %vm681_vm3, %v670_v13, 0.0 }
 0x12e   :  { %623 = vst.msk [vmem:[#allocation9 + $0x18] sm:$0xf] %vm616_vm2, %v1562_v3  ;;  %v1843_v25 = vmax.f32 %v390_v19, 0.0  ;;  %v1845_v26 = vmax.f32 %v385_v20, 0.0  ;;  %v1325_v27 = vpop.f32.mrb[12].mxu0  ;;  %v742_v31 = vsel %vm681_vm3, %v669_v14, 0.0  ;;  %v315_v33 = vadd.f32 %v1667_v38, %v314_v15 }
 0x12f   :  { %607 = vst.msk [vmem:[#allocation9 + $0x5c] sm:$0xf] %vm583_vm1, %v1220_v10  ;;  %606 = vst.msk [vmem:[#allocation9 + $0x58] sm:$0xf] %vm583_vm1, %v1219_v12  ;;  %v1206_v22 = vpack.c.bf16 %v1826_v17, %v1826_v17  ;;  %v1205_v24 = vpack.c.bf16 %v1828_v18, %v1828_v18  ;;  %v1349_v28 = vpop.f32.mrb[12].mxu1  ;;  %v324_v34 = vpop.f32.mrb[13].mxu0  ;;  %v656_v39 = vmul.f32 %v1777_v44, %v1777_v44 }
 0x130   :  { %640 = vst.msk [vmem:[#allocation9 + $0x5c] sm:$0xf] %vm616_vm2, %v1562_v3  ;;  %639 = vst.msk [vmem:[#allocation9 + $0x58] sm:$0xf] %vm616_vm2, %v1562_v3  ;;  %698 = vadd.xlane.f32.xlu1 %v697_v5  ;;  %v404_v37 = vpop.f32.mrb[13].mxu1  ;;  %v655_v40 = vmul.f32 %v1785_v53, %v1785_v53  ;;  %v1222_v41 = vpack.c.bf16 %v1843_v25, %v1843_v25  ;;  %v1221_v42 = vpack.c.bf16 %v1845_v26, %v1845_v26 }
 0x131   :  { %695 = vadd.xlane.f32.xlu0 %v694_v21  ;;  %593 = vst.msk [vmem:[#allocation9 + $0x24] sm:$0xf] %vm583_vm1, %v1206_v22  ;;  %592 = vst.msk [vmem:[#allocation9 + $0x20] sm:$0xf] %vm583_vm1, %v1205_v24  ;;  %v1865_v43 = vmax.f32 %v320_v32, 0.0  ;;  %v1867_v45 = vmax.f32 %v315_v33, 0.0  ;;  %v400_v46 = vadd.f32 %v1346_v9, %v1667_v38  ;;  %v395_v51 = vadd.f32 %v1667_v38, %v394_v16 }
 0x132   :  { %626 = vst.msk [vmem:[#allocation9 + $0x24] sm:$0xf] %vm616_vm2, %v1562_v3  ;;  %625 = vst.msk [vmem:[#allocation9 + $0x20] sm:$0xf] %vm616_vm2, %v1562_v3  ;;  %v672_v52 = vmul.f32 %v1804_v62, %v1804_v62  ;;  %v1328_v54 = vpop.f32.mrb[14].mxu0  ;;  %v703_v2 = vsel %vm681_vm3, %v656_v39, 0.0  ;;  %v330_v5 = vadd.f32 %v1325_v27, %v1667_v38  ;;  %v325_v6 = vadd.f32 %v1667_v38, %v324_v34 }
 0x133   :  { %609 = vst.msk [vmem:[#allocation9 + $0x64] sm:$0xf] %vm583_vm1, %v1222_v41  ;;  %608 = vst.msk [vmem:[#allocation9 + $0x60] sm:$0xf] %vm583_vm1, %v1221_v42  ;;  %v1352_v55 = vpop.f32.mrb[14].mxu1  ;;  %v1208_v56 = vpack.c.bf16 %v1865_v43, %v1865_v43  ;;  %v1207_v57 = vpack.c.bf16 %v1867_v45, %v1867_v45  ;;  %v1883_v58 = vmax.f32 %v400_v46, 0.0  ;;  %v671_v8 = vmul.f32 %v1806_v1, %v1806_v1 }
 0x134   :  { %746 = vadd.xlane.f32.xlu1 %v745_v30  ;;  %642 = vst.msk [vmem:[#allocation9 + $0x64] sm:$0xf] %vm616_vm2, %v1562_v3  ;;  %641 = vst.msk [vmem:[#allocation9 + $0x60] sm:$0xf] %vm616_vm2, %v1562_v3  ;;  %v1885_v59 = vmax.f32 %v395_v51, 0.0  ;;  %v334_v60 = vpop.f32.mrb[15].mxu0  ;;  %v410_v14 = vadd.f32 %v1349_v28, %v1667_v38  ;;  %v405_v15 = vadd.f32 %v1667_v38, %v404_v37 }
 0x135   :  { %v414_v61 = vpop.f32.mrb[15].mxu1  ;;  %743 = vadd.xlane.f32.xlu0 %v742_v31  ;;  %v700_v7 = vsel %vm681_vm3, %v655_v40, 0.0  ;;  %595 = vst.msk [vmem:[#allocation9 + $0x2c] sm:$0xf] %vm583_vm1, %v1208_v56  ;;  %594 = vst.msk [vmem:[#allocation9 + $0x28] sm:$0xf] %vm583_vm1, %v1207_v57  ;;  %v1224_v9 = vpack.c.bf16 %v1883_v58, %v1883_v58  ;;  %v658_v19 = vmul.f32 %v1826_v17, %v1826_v17 }
 0x136   :  { %v1223_v10 = vpack.c.bf16 %v1885_v59, %v1885_v59  ;;  %628 = vst.msk [vmem:[#allocation9 + $0x2c] sm:$0xf] %vm616_vm2, %v1562_v3  ;;  %627 = vst.msk [vmem:[#allocation9 + $0x28] sm:$0xf] %vm616_vm2, %v1562_v3  ;;  %v1903_v12 = vmax.f32 %v330_v5, 0.0  ;;  %v1905_v13 = vmax.f32 %v325_v6, 0.0  ;;  %v657_v20 = vmul.f32 %v1828_v18, %v1828_v18 }
 0x137   :  { %v751_v16 = vsel %vm681_vm3, %v672_v52, 0.0  ;;  %611 = vst.msk [vmem:[#allocation9 + $0x6c] sm:$0xf] %vm583_vm1, %v1224_v9  ;;  %v1924_v24 = vmax.f32 %v410_v14, 0.0  ;;  %v1926_v27 = vmax.f32 %v405_v15, 0.0  ;;  %v748_v28 = vsel %vm681_vm3, %v671_v8, 0.0 }
 0x138   :  { %704 = vadd.xlane.f32.xlu1 %v703_v2  ;;  %610 = vst.msk [vmem:[#allocation9 + $0x68] sm:$0xf] %vm583_vm1, %v1223_v10  ;;  %v1210_v21 = vpack.c.bf16 %v1903_v12, %v1903_v12  ;;  %v1209_v22 = vpack.c.bf16 %v1905_v13, %v1905_v13  ;;  %v340_v30 = vadd.f32 %v1328_v54, %v1667_v38  ;;  %v709_v41 = vsel %vm681_vm3, %v658_v19, 0.0 }
 0x139   :  { %701 = vadd.xlane.f32.xlu0 %v700_v7  ;;  %644 = vst.msk [vmem:[#allocation9 + $0x6c] sm:$0xf] %vm616_vm2, %v1562_v3  ;;  %643 = vst.msk [vmem:[#allocation9 + $0x68] sm:$0xf] %vm616_vm2, %v1562_v3  ;;  %v335_v31 = vadd.f32 %v1667_v38, %v334_v60  ;;  %v1226_v32 = vpack.c.bf16 %v1924_v24, %v1924_v24  ;;  %v1225_v33 = vpack.c.bf16 %v1926_v27, %v1926_v27 }
 0x13a   :  { %597 = vst.msk [vmem:[#allocation9 + $0x34] sm:$0xf] %vm583_vm1, %v1210_v21  ;;  %596 = vst.msk [vmem:[#allocation9 + $0x30] sm:$0xf] %vm583_vm1, %v1209_v22  ;;  %v1941_v34 = vmax.f32 %v340_v30, 0.0  ;;  %v420_v39 = vadd.f32 %v1352_v55, %v1667_v38  ;;  %v415_v40 = vadd.f32 %v1667_v38, %v414_v61  ;;  %v706_v42 = vsel %vm681_vm3, %v657_v20, 0.0 }
 0x13b   :  { %630 = vst.msk [vmem:[#allocation9 + $0x34] sm:$0xf] %vm616_vm2, %v1562_v3  ;;  %629 = vst.msk [vmem:[#allocation9 + $0x30] sm:$0xf] %vm616_vm2, %v1562_v3  ;;  %v1943_v37 = vmax.f32 %v335_v31, 0.0  ;;  %v674_v46 = vmul.f32 %v1843_v25, %v1843_v25  ;;  %v673_v51 = vmul.f32 %v1845_v26, %v1845_v26  ;;  %v660_v61 = vmul.f32 %v1865_v43, %v1865_v43 }
 0x13c   :  { %752 = vadd.xlane.f32.xlu1 %v751_v16  ;;  %613 = vst.msk [vmem:[#allocation9 + $0x74] sm:$0xf] %vm583_vm1, %v1226_v32  ;;  %612 = vst.msk [vmem:[#allocation9 + $0x70] sm:$0xf] %vm583_vm1, %v1225_v33  ;;  %v1212_v38 = vpack.c.bf16 %v1941_v34, %v1941_v34  ;;  %v1963_v54 = vmax.f32 %v420_v39, 0.0  ;;  %v1965_v55 = vmax.f32 %v415_v40, 0.0  ;;  %v659_v5 = vmul.f32 %v1867_v45, %v1867_v45 }
 0x13d   :  { %749 = vadd.xlane.f32.xlu0 %v748_v28  ;;  %646 = vst.msk [vmem:[#allocation9 + $0x74] sm:$0xf] %vm616_vm2, %v1562_v3  ;;  %645 = vst.msk [vmem:[#allocation9 + $0x70] sm:$0xf] %vm616_vm2, %v1562_v3  ;;  %v1211_v52 = vpack.c.bf16 %v1943_v37, %v1943_v37  ;;  %v757_v60 = vsel %vm681_vm3, %v674_v46, 0.0  ;;  %v754_v2 = vsel %vm681_vm3, %v673_v51, 0.0  ;;  %v676_v7 = vmul.f32 %v1883_v58, %v1883_v58 }
 0x13e   :  { %599 = vst.msk [vmem:[#allocation9 + $0x3c] sm:$0xf] %vm583_vm1, %v1212_v38  ;;  %v1228_v56 = vpack.c.bf16 %v1963_v54, %v1963_v54  ;;  %v1227_v57 = vpack.c.bf16 %v1965_v55, %v1965_v55  ;;  %v715_v6 = vsel %vm681_vm3, %v660_v61, 0.0  ;;  %v712_v8 = vsel %vm681_vm3, %v659_v5, 0.0 }
 0x13f   :  { %598 = vst.msk [vmem:[#allocation9 + $0x38] sm:$0xf] %vm583_vm1, %v1211_v52  ;;  %v675_v9 = vmul.f32 %v1885_v59, %v1885_v59  ;;  %v763_v10 = vsel %vm681_vm3, %v676_v7, 0.0  ;;  %v662_v14 = vmul.f32 %v1903_v12, %v1903_v12  ;;  %v661_v16 = vmul.f32 %v1905_v13, %v1905_v13 }
 0x140   :  { %710 = vadd.xlane.f32.xlu1 %v709_v41  ;;  %632 = vst.msk [vmem:[#allocation9 + $0x3c] sm:$0xf] %vm616_vm2, %v1562_v3  ;;  %631 = vst.msk [vmem:[#allocation9 + $0x38] sm:$0xf] %vm616_vm2, %v1562_v3  ;;  %v678_v20 = vmul.f32 %v1924_v24, %v1924_v24  ;;  %v677_v22 = vmul.f32 %v1926_v27, %v1926_v27  ;;  %v664_v30 = vmul.f32 %v1941_v34, %v1941_v34 }
 0x141   :  { %707 = vadd.xlane.f32.xlu0 %v706_v42  ;;  %615 = vst.msk [vmem:[#allocation9 + $0x7c] sm:$0xf] %vm583_vm1, %v1228_v56  ;;  %614 = vst.msk [vmem:[#allocation9 + $0x78] sm:$0xf] %vm583_vm1, %v1227_v57  ;;  %v760_v15 = vsel %vm681_vm3, %v675_v9, 0.0  ;;  %v721_v19 = vsel %vm681_vm3, %v662_v14, 0.0  ;;  %v663_v32 = vmul.f32 %v1943_v37, %v1943_v37  ;;  %v680_v39 = vmul.f32 %v1963_v54, %v1963_v54 }
 0x142   :  { %648 = vst.msk [vmem:[#allocation9 + $0x7c] sm:$0xf] %vm616_vm2, %v1562_v3  ;;  %647 = vst.msk [vmem:[#allocation9 + $0x78] sm:$0xf] %vm616_vm2, %v1562_v3  ;;  %v718_v21 = vsel %vm681_vm3, %v661_v16, 0.0  ;;  %v769_v28 = vsel %vm681_vm3, %v678_v20, 0.0  ;;  %v679_v41 = vmul.f32 %v1965_v55, %v1965_v55 }
 0x143   :  { %v766_v31 = vsel %vm681_vm3, %v677_v22, 0.0  ;;  %v727_v33 = vsel %vm681_vm3, %v664_v30, 0.0  ;;  %v724_v40 = vsel %vm681_vm3, %v663_v32, 0.0  ;;  %v775_v42 = vsel %vm681_vm3, %v680_v39, 0.0 }
 0x144   :  { %758 = vadd.xlane.f32.xlu1 %v757_v60  ;;  %v772_v46 = vsel %vm681_vm3, %v679_v41, 0.0 }
 0x145   :  { %755 = vadd.xlane.f32.xlu0 %v754_v2 }
 0x148   :  { %716 = vadd.xlane.f32.xlu1 %v715_v6 }
 0x149   :  { %713 = vadd.xlane.f32.xlu0 %v712_v8 }
 0x14c   :  { %764 = vadd.xlane.f32.xlu1 %v763_v10 }
 0x14d   :  { %761 = vadd.xlane.f32.xlu0 %v760_v15 }
 0x150   :  { %722 = vadd.xlane.f32.xlu1 %v721_v19 }
 0x151   :  { %719 = vadd.xlane.f32.xlu0 %v718_v21 }
 0x154   :  { %770 = vadd.xlane.f32.xlu1 %v769_v28 }
 0x155   :  { %767 = vadd.xlane.f32.xlu0 %v766_v31 }
 0x158   :  { %728 = vadd.xlane.f32.xlu1 %v727_v33 }
 0x159   :  { %725 = vadd.xlane.f32.xlu0 %v724_v40 }
 0x15c   :  { %776 = vadd.xlane.f32.xlu1 %v775_v42 }
 0x15d   :  { %773 = vadd.xlane.f32.xlu0 %v772_v46 }
 0x15e   :  { %1516 = shalt.err (!%p1513_p0)
}
 0x15f   :  { %s1517_s30 = scalar_lea.hbm %s2183_s4, 2048 }
 0x160   :  { %p1518_p1 = scmp.ne.s32.totalorder %s2183_s4, %s1517_s30  ;;  %p1521_p2 = scmp.lt.u32.totalorder %s1517_s30, %s2183_s4 }
 0x162   :  { %p1523_p3 = pnand %p1521_p2, %p1518_p1 }
 0x164   :  { %1526 = shalt.err (!%p1523_p3)
}
 0x165   :  { %s1564_s9 = smov 64   ;;  %s1565_s10 = smov 4  }
 0x166   :  { %1089 = dma.vmem_to_hbm [thread:$0]  %s1084_s26, 2048, %s2183_s4, [#allocation10], %s1564_s9, %s1564_s9, %s1565_s10  }
 0x167   :  { %s1566_s4 = smov [#allocation8]  }
 0x168   :  { %s1071_s1 = sshll.u32 %s1566_s4, 4  ;;  %s1072_s1 = int_to_ptr.vmem [resolvable:$true] %s1071_s1 }
 0x169   :  { %s1527_s13 = scalar_lea.vmem %s1072_s1, 2048  ;;  %p1532_p5 = scmp.lt.s32.totalorder %s1072_s1, %s1072_s1 }
 0x16a   :  { %p1528_p4 = scmp.ne.s32.totalorder %s1072_s1, %s1527_s13  ;;  %p1533_p6 = scmp.lt.s32.totalorder %s1527_s13, %s1527_s13 }
 0x16c   :  { %p1534_p7 = por %p1533_p6, %p1532_p5 }
 0x16e   :  { %p1535_p8 = pnand %p1534_p7, %p1528_p4 }
 0x1ad   :  { %v735_v51 = vpop.xlane.xlu1 %734 }
 0x1ae   :  { %v795_v38 = vmax.f32 %v735_v51, 1e-24  ;;  %v687_v52 = vpop.xlane.xlu0 %686 }
 0x1af   :  { %v779_v56 = vmax.f32 %v687_v52, 1e-24 }
 0x1b0   :  { %1375 = vrsqrt.f32 %v795_v38 }
 0x1b1   :  { %1377 = vrsqrt.f32 %v779_v56  ;;  %v693_v57 = vpop.xlane.xlu1 %692 }
 0x1b2   :  { %v781_v60 = vmax.f32 %v693_v57, 1e-24  ;;  %v684_v61 = vpop.xlane.xlu0 %683 }
 0x1b3   :  { %v778_v2 = vmax.f32 %v684_v61, 1e-24 }
 0x1b4   :  { %1379 = vrsqrt.f32 %v781_v60 }
 0x1b5   :  { %1381 = vrsqrt.f32 %v778_v2  ;;  %v741_v5 = vpop.xlane.xlu1 %740 }
 0x1b6   :  { %v797_v6 = vmax.f32 %v741_v5, 1e-24  ;;  %v732_v7 = vpop.xlane.xlu0 %731 }
 0x1b7   :  { %v794_v8 = vmax.f32 %v732_v7, 1e-24 }
 0x1b8   :  { %1383 = vrsqrt.f32 %v797_v6 }
 0x1b9   :  { %1385 = vrsqrt.f32 %v794_v8  ;;  %v690_v9 = vpop.xlane.xlu1 %689 }
 0x1ba   :  { %v1376_v10 = vpop.eup %1375  ;;  %v780_v14 = vmax.f32 %v690_v9, 1e-24  ;;  %v738_v15 = vpop.xlane.xlu0 %737 }
 0x1bb   :  { %v1378_v16 = vpop.eup %1377  ;;  %v859_v19 = vmul.f32 %v1376_v10, %v1675_v48  ;;  %v796_v20 = vmax.f32 %v738_v15, 1e-24 }
 0x1bc   :  { %v843_v21 = vmul.f32 %v1378_v16, %v1673_v47  ;;  %1387 = vrsqrt.f32 %v780_v14 }
 0x1bd   :  { %v1246_v22 = vpack.c.bf16 %v859_v19, %v859_v19  ;;  %1389 = vrsqrt.f32 %v796_v20  ;;  %v699_v28 = vpop.xlane.xlu1 %698 }
 0x1be   :  { %v1380_v30 = vpop.eup %1379  ;;  %v1230_v31 = vpack.c.bf16 %v843_v21, %v843_v21  ;;  %v783_v32 = vmax.f32 %v699_v28, 1e-24  ;;  %v696_v33 = vpop.xlane.xlu0 %695 }
 0x1bf   :  { %v1382_v39 = vpop.eup %1381  ;;  %1019 = vst.msk [vmem:[#allocation8 + $0x44] sm:$0xf] %vm583_vm1, %v1246_v22  ;;  %v845_v40 = vmul.f32 %v1380_v30, %v1696_v63  ;;  %v782_v41 = vmax.f32 %v696_v33, 1e-24 }
 0x1c0   :  { %1051 = vst.msk [vmem:[#allocation8 + $0x44] sm:$0xf] %vm616_vm2, %v1562_v3  ;;  %v842_v47 = vmul.f32 %v1382_v39, %v1677_v49  ;;  %1391 = vrsqrt.f32 %v783_v32 }
 0x1c1   :  { %1003 = vst.msk [vmem:[#allocation8 + $0x4] sm:$0xf] %vm583_vm1, %v1230_v31  ;;  %v1232_v48 = vpack.c.bf16 %v845_v40, %v845_v40  ;;  %1393 = vrsqrt.f32 %v782_v41  ;;  %v747_v42 = vpop.xlane.xlu1 %746 }
 0x1c2   :  { %1035 = vst.msk [vmem:[#allocation8 + $0x4] sm:$0xf] %vm616_vm2, %v1562_v3  ;;  %v1384_v46 = vpop.eup %1383  ;;  %v1229_v51 = vpack.c.bf16 %v842_v47, %v842_v47  ;;  %v799_v38 = vmax.f32 %v747_v42, 1e-24  ;;  %v744_v52 = vpop.xlane.xlu0 %743 }
 0x1c3   :  { %v1386_v63 = vpop.eup %1385  ;;  %1005 = vst.msk [vmem:[#allocation8 + $0xc] sm:$0xf] %vm583_vm1, %v1232_v48  ;;  %v861_v56 = vmul.f32 %v1384_v46, %v1698_v0  ;;  %v798_v57 = vmax.f32 %v744_v52, 1e-24 }
 0x1c4   :  { %1037 = vst.msk [vmem:[#allocation8 + $0xc] sm:$0xf] %vm616_vm2, %v1562_v3  ;;  %v858_v49 = vmul.f32 %v1386_v63, %v1679_v50  ;;  %1395 = vrsqrt.f32 %v799_v38 }
 0x1c5   :  { %1002 = vst.msk [vmem:[#allocation8] sm:$0xf] %vm583_vm1, %v1229_v51  ;;  %v1248_v60 = vpack.c.bf16 %v861_v56, %v861_v56  ;;  %1397 = vrsqrt.f32 %v798_v57  ;;  %v705_v61 = vpop.xlane.xlu1 %704 }
 0x1c6   :  { %1034 = vst.msk [vmem:[#allocation8] sm:$0xf] %vm616_vm2, %v1562_v3  ;;  %v1388_v2 = vpop.eup %1387  ;;  %v1245_v5 = vpack.c.bf16 %v858_v49, %v858_v49  ;;  %v785_v6 = vmax.f32 %v705_v61, 1e-24  ;;  %v702_v7 = vpop.xlane.xlu0 %701 }
 0x1c7   :  { %v1390_v0 = vpop.eup %1389  ;;  %1021 = vst.msk [vmem:[#allocation8 + $0x4c] sm:$0xf] %vm583_vm1, %v1248_v60  ;;  %v844_v8 = vmul.f32 %v1388_v2, %v1709_v4  ;;  %v784_v9 = vmax.f32 %v702_v7, 1e-24 }
 0x1c8   :  { %1053 = vst.msk [vmem:[#allocation8 + $0x4c] sm:$0xf] %vm616_vm2, %v1562_v3  ;;  %v860_v50 = vmul.f32 %v1390_v0, %v1722_v11  ;;  %1399 = vrsqrt.f32 %v785_v6 }
 0x1c9   :  { %1018 = vst.msk [vmem:[#allocation8 + $0x40] sm:$0xf] %vm583_vm1, %v1245_v5  ;;  %v1231_v10 = vpack.c.bf16 %v844_v8, %v844_v8  ;;  %1401 = vrsqrt.f32 %v784_v9  ;;  %v753_v14 = vpop.xlane.xlu1 %752 }
 0x1ca   :  { %1050 = vst.msk [vmem:[#allocation8 + $0x40] sm:$0xf] %vm616_vm2, %v1562_v3  ;;  %v1392_v15 = vpop.eup %1391  ;;  %v1247_v16 = vpack.c.bf16 %v860_v50, %v860_v50  ;;  %v801_v19 = vmax.f32 %v753_v14, 1e-24  ;;  %v750_v20 = vpop.xlane.xlu0 %749 }
 0x1cb   :  { %v1394_v4 = vpop.eup %1393  ;;  %1004 = vst.msk [vmem:[#allocation8 + $0x8] sm:$0xf] %vm583_vm1, %v1231_v10  ;;  %v847_v21 = vmul.f32 %v1392_v15, %v1745_v23  ;;  %v800_v22 = vmax.f32 %v750_v20, 1e-24 }
 0x1cc   :  { %1036 = vst.msk [vmem:[#allocation8 + $0x8] sm:$0xf] %vm616_vm2, %v1562_v3  ;;  %v846_v11 = vmul.f32 %v1394_v4, %v1753_v29  ;;  %1403 = vrsqrt.f32 %v801_v19 }
 0x1cd   :  { %1020 = vst.msk [vmem:[#allocation8 + $0x48] sm:$0xf] %vm583_vm1, %v1247_v16  ;;  %v1234_v28 = vpack.c.bf16 %v847_v21, %v847_v21  ;;  %1405 = vrsqrt.f32 %v800_v22  ;;  %v711_v30 = vpop.xlane.xlu1 %710 }
 0x1ce   :  { %1052 = vst.msk [vmem:[#allocation8 + $0x48] sm:$0xf] %vm616_vm2, %v1562_v3  ;;  %v1396_v31 = vpop.eup %1395  ;;  %v1233_v32 = vpack.c.bf16 %v846_v11, %v846_v11  ;;  %v787_v33 = vmax.f32 %v711_v30, 1e-24  ;;  %v708_v39 = vpop.xlane.xlu0 %707 }
 0x1cf   :  { %v1398_v23 = vpop.eup %1397  ;;  %1007 = vst.msk [vmem:[#allocation8 + $0x14] sm:$0xf] %vm583_vm1, %v1234_v28  ;;  %v863_v40 = vmul.f32 %v1396_v31, %v1762_v35  ;;  %v786_v41 = vmax.f32 %v708_v39, 1e-24 }
 0x1d0   :  { %1039 = vst.msk [vmem:[#allocation8 + $0x14] sm:$0xf] %vm616_vm2, %v1562_v3  ;;  %v862_v29 = vmul.f32 %v1398_v23, %v1764_v36  ;;  %1407 = vrsqrt.f32 %v787_v33 }
 0x1d1   :  { %1006 = vst.msk [vmem:[#allocation8 + $0x10] sm:$0xf] %vm583_vm1, %v1233_v32  ;;  %v1250_v47 = vpack.c.bf16 %v863_v40, %v863_v40  ;;  %1409 = vrsqrt.f32 %v786_v41  ;;  %v759_v48 = vpop.xlane.xlu1 %758 }
 0x1d2   :  { %1038 = vst.msk [vmem:[#allocation8 + $0x10] sm:$0xf] %vm616_vm2, %v1562_v3  ;;  %v1400_v42 = vpop.eup %1399  ;;  %v1249_v46 = vpack.c.bf16 %v862_v29, %v862_v29  ;;  %v803_v51 = vmax.f32 %v759_v48, 1e-24  ;;  %v756_v38 = vpop.xlane.xlu0 %755 }
 0x1d3   :  { %v1402_v35 = vpop.eup %1401  ;;  %1023 = vst.msk [vmem:[#allocation8 + $0x54] sm:$0xf] %vm583_vm1, %v1250_v47  ;;  %v849_v52 = vmul.f32 %v1400_v42, %v1777_v44  ;;  %v802_v63 = vmax.f32 %v756_v38, 1e-24 }
 0x1d4   :  { %1055 = vst.msk [vmem:[#allocation8 + $0x54] sm:$0xf] %vm616_vm2, %v1562_v3  ;;  %v848_v36 = vmul.f32 %v1402_v35, %v1785_v53  ;;  %1411 = vrsqrt.f32 %v803_v51 }
 0x1d5   :  { %1022 = vst.msk [vmem:[#allocation8 + $0x50] sm:$0xf] %vm583_vm1, %v1249_v46  ;;  %v1236_v56 = vpack.c.bf16 %v849_v52, %v849_v52  ;;  %1413 = vrsqrt.f32 %v802_v63  ;;  %v717_v57 = vpop.xlane.xlu1 %716 }
 0x1d6   :  { %1054 = vst.msk [vmem:[#allocation8 + $0x50] sm:$0xf] %vm616_vm2, %v1562_v3  ;;  %v1404_v49 = vpop.eup %1403  ;;  %v1235_v60 = vpack.c.bf16 %v848_v36, %v848_v36  ;;  %v789_v61 = vmax.f32 %v717_v57, 1e-24  ;;  %v714_v2 = vpop.xlane.xlu0 %713 }
 0x1d7   :  { %v1406_v44 = vpop.eup %1405  ;;  %1009 = vst.msk [vmem:[#allocation8 + $0x1c] sm:$0xf] %vm583_vm1, %v1236_v56  ;;  %v865_v5 = vmul.f32 %v1404_v49, %v1804_v62  ;;  %v788_v6 = vmax.f32 %v714_v2, 1e-24 }
 0x1d8   :  { %1041 = vst.msk [vmem:[#allocation8 + $0x1c] sm:$0xf] %vm616_vm2, %v1562_v3  ;;  %v864_v53 = vmul.f32 %v1406_v44, %v1806_v1  ;;  %1415 = vrsqrt.f32 %v789_v61 }
 0x1d9   :  { %1008 = vst.msk [vmem:[#allocation8 + $0x18] sm:$0xf] %vm583_vm1, %v1235_v60  ;;  %v1252_v7 = vpack.c.bf16 %v865_v5, %v865_v5  ;;  %1417 = vrsqrt.f32 %v788_v6  ;;  %v765_v0 = vpop.xlane.xlu1 %764 }
 0x1da   :  { %1040 = vst.msk [vmem:[#allocation8 + $0x18] sm:$0xf] %vm616_vm2, %v1562_v3  ;;  %v1408_v8 = vpop.eup %1407  ;;  %v1251_v9 = vpack.c.bf16 %v864_v53, %v864_v53  ;;  %v805_v50 = vmax.f32 %v765_v0, 1e-24  ;;  %v762_v10 = vpop.xlane.xlu0 %761 }
 0x1db   :  { %v1410_v62 = vpop.eup %1409  ;;  %1025 = vst.msk [vmem:[#allocation8 + $0x5c] sm:$0xf] %vm583_vm1, %v1252_v7  ;;  %v851_v14 = vmul.f32 %v1408_v8, %v1826_v17  ;;  %v804_v15 = vmax.f32 %v762_v10, 1e-24 }
 0x1dc   :  { %1057 = vst.msk [vmem:[#allocation8 + $0x5c] sm:$0xf] %vm616_vm2, %v1562_v3  ;;  %v850_v1 = vmul.f32 %v1410_v62, %v1828_v18  ;;  %1419 = vrsqrt.f32 %v805_v50 }
 0x1dd   :  { %1024 = vst.msk [vmem:[#allocation8 + $0x58] sm:$0xf] %vm583_vm1, %v1251_v9  ;;  %v1238_v16 = vpack.c.bf16 %v851_v14, %v851_v14  ;;  %1421 = vrsqrt.f32 %v804_v15  ;;  %v723_v19 = vpop.xlane.xlu1 %722 }
 0x1de   :  { %1056 = vst.msk [vmem:[#allocation8 + $0x58] sm:$0xf] %vm616_vm2, %v1562_v3  ;;  %v1412_v20 = vpop.eup %1411  ;;  %v1237_v4 = vpack.c.bf16 %v850_v1, %v850_v1  ;;  %v791_v21 = vmax.f32 %v723_v19, 1e-24  ;;  %v720_v22 = vpop.xlane.xlu0 %719 }
 0x1df   :  { %v1414_v17 = vpop.eup %1413  ;;  %1011 = vst.msk [vmem:[#allocation8 + $0x24] sm:$0xf] %vm583_vm1, %v1238_v16  ;;  %v867_v11 = vmul.f32 %v1412_v20, %v1843_v25  ;;  %v790_v28 = vmax.f32 %v720_v22, 1e-24 }
 0x1e0   :  { %1043 = vst.msk [vmem:[#allocation8 + $0x24] sm:$0xf] %vm616_vm2, %v1562_v3  ;;  %v866_v18 = vmul.f32 %v1414_v17, %v1845_v26  ;;  %1423 = vrsqrt.f32 %v791_v21 }
 0x1e1   :  { %1010 = vst.msk [vmem:[#allocation8 + $0x20] sm:$0xf] %vm583_vm1, %v1237_v4  ;;  %v1254_v30 = vpack.c.bf16 %v867_v11, %v867_v11  ;;  %1425 = vrsqrt.f32 %v790_v28  ;;  %v771_v31 = vpop.xlane.xlu1 %770 }
 0x1e2   :  { %1042 = vst.msk [vmem:[#allocation8 + $0x20] sm:$0xf] %vm616_vm2, %v1562_v3  ;;  %v1416_v32 = vpop.eup %1415  ;;  %v1253_v33 = vpack.c.bf16 %v866_v18, %v866_v18  ;;  %v807_v39 = vmax.f32 %v771_v31, 1e-24  ;;  %v768_v23 = vpop.xlane.xlu0 %767 }
 0x1e3   :  { %v1418_v25 = vpop.eup %1417  ;;  %1027 = vst.msk [vmem:[#allocation8 + $0x64] sm:$0xf] %vm583_vm1, %v1254_v30  ;;  %v853_v40 = vmul.f32 %v1416_v32, %v1865_v43  ;;  %v806_v41 = vmax.f32 %v768_v23, 1e-24 }
 0x1e4   :  { %1059 = vst.msk [vmem:[#allocation8 + $0x64] sm:$0xf] %vm616_vm2, %v1562_v3  ;;  %v852_v26 = vmul.f32 %v1418_v25, %v1867_v45  ;;  %1427 = vrsqrt.f32 %v807_v39 }
 0x1e5   :  { %1026 = vst.msk [vmem:[#allocation8 + $0x60] sm:$0xf] %vm583_vm1, %v1253_v33  ;;  %v1240_v29 = vpack.c.bf16 %v853_v40, %v853_v40  ;;  %1429 = vrsqrt.f32 %v806_v41  ;;  %v729_v47 = vpop.xlane.xlu1 %728 }
 0x1e6   :  { %1058 = vst.msk [vmem:[#allocation8 + $0x60] sm:$0xf] %vm616_vm2, %v1562_v3  ;;  %v1420_v48 = vpop.eup %1419  ;;  %v1239_v42 = vpack.c.bf16 %v852_v26, %v852_v26  ;;  %v793_v46 = vmax.f32 %v729_v47, 1e-24  ;;  %v726_v51 = vpop.xlane.xlu0 %725 }
 0x1e7   :  { %v1422_v43 = vpop.eup %1421  ;;  %1013 = vst.msk [vmem:[#allocation8 + $0x2c] sm:$0xf] %vm583_vm1, %v1240_v29  ;;  %v869_v38 = vmul.f32 %v1420_v48, %v1883_v58  ;;  %v792_v35 = vmax.f32 %v726_v51, 1e-24 }
 0x1e8   :  { %1045 = vst.msk [vmem:[#allocation8 + $0x2c] sm:$0xf] %vm616_vm2, %v1562_v3  ;;  %v868_v45 = vmul.f32 %v1422_v43, %v1885_v59  ;;  %1431 = vrsqrt.f32 %v793_v46 }
 0x1e9   :  { %1012 = vst.msk [vmem:[#allocation8 + $0x28] sm:$0xf] %vm583_vm1, %v1239_v42  ;;  %v1256_v52 = vpack.c.bf16 %v869_v38, %v869_v38  ;;  %1433 = vrsqrt.f32 %v792_v35  ;;  %v777_v63 = vpop.xlane.xlu1 %776 }
 0x1ea   :  { %1044 = vst.msk [vmem:[#allocation8 + $0x28] sm:$0xf] %vm616_vm2, %v1562_v3  ;;  %v1424_v36 = vpop.eup %1423  ;;  %v1255_v56 = vpack.c.bf16 %v868_v45, %v868_v45  ;;  %v809_v57 = vmax.f32 %v777_v63, 1e-24  ;;  %v774_v49 = vpop.xlane.xlu0 %773 }
 0x1eb   :  { %v1426_v58 = vpop.eup %1425  ;;  %1029 = vst.msk [vmem:[#allocation8 + $0x6c] sm:$0xf] %vm583_vm1, %v1256_v52  ;;  %v855_v60 = vmul.f32 %v1424_v36, %v1903_v12  ;;  %v808_v61 = vmax.f32 %v774_v49, 1e-24 }
 0x1ec   :  { %1061 = vst.msk [vmem:[#allocation8 + $0x6c] sm:$0xf] %vm616_vm2, %v1562_v3  ;;  %v854_v59 = vmul.f32 %v1426_v58, %v1905_v13  ;;  %1435 = vrsqrt.f32 %v809_v57 }
 0x1ed   :  { %1028 = vst.msk [vmem:[#allocation8 + $0x68] sm:$0xf] %vm583_vm1, %v1255_v56  ;;  %v1242_v2 = vpack.c.bf16 %v855_v60, %v855_v60  ;;  %1437 = vrsqrt.f32 %v808_v61 }
 0x1ee   :  { %1060 = vst.msk [vmem:[#allocation8 + $0x68] sm:$0xf] %vm616_vm2, %v1562_v3  ;;  %v1428_v44 = vpop.eup %1427  ;;  %v1241_v5 = vpack.c.bf16 %v854_v59, %v854_v59 }
 0x1ef   :  { %v1430_v6 = vpop.eup %1429  ;;  %1015 = vst.msk [vmem:[#allocation8 + $0x34] sm:$0xf] %vm583_vm1, %v1242_v2  ;;  %v871_v12 = vmul.f32 %v1428_v44, %v1924_v24 }
 0x1f0   :  { %1047 = vst.msk [vmem:[#allocation8 + $0x34] sm:$0xf] %vm616_vm2, %v1562_v3  ;;  %v870_v13 = vmul.f32 %v1430_v6, %v1926_v27 }
 0x1f1   :  { %1014 = vst.msk [vmem:[#allocation8 + $0x30] sm:$0xf] %vm583_vm1, %v1241_v5  ;;  %v1258_v53 = vpack.c.bf16 %v871_v12, %v871_v12 }
 0x1f2   :  { %1046 = vst.msk [vmem:[#allocation8 + $0x30] sm:$0xf] %vm616_vm2, %v1562_v3  ;;  %v1432_v7 = vpop.eup %1431  ;;  %v1257_v0 = vpack.c.bf16 %v870_v13, %v870_v13 }
 0x1f3   :  { %v1434_v8 = vpop.eup %1433  ;;  %1031 = vst.msk [vmem:[#allocation8 + $0x74] sm:$0xf] %vm583_vm1, %v1258_v53  ;;  %v857_v9 = vmul.f32 %v1432_v7, %v1941_v34 }
 0x1f4   :  { %1063 = vst.msk [vmem:[#allocation8 + $0x74] sm:$0xf] %vm616_vm2, %v1562_v3  ;;  %v856_v24 = vmul.f32 %v1434_v8, %v1943_v37 }
 0x1f5   :  { %1030 = vst.msk [vmem:[#allocation8 + $0x70] sm:$0xf] %vm583_vm1, %v1257_v0  ;;  %v1244_v27 = vpack.c.bf16 %v857_v9, %v857_v9 }
 0x1f6   :  { %1062 = vst.msk [vmem:[#allocation8 + $0x70] sm:$0xf] %vm616_vm2, %v1562_v3  ;;  %v1436_v50 = vpop.eup %1435  ;;  %v1243_v10 = vpack.c.bf16 %v856_v24, %v856_v24 }
 0x1f7   :  { %v1438_v62 = vpop.eup %1437  ;;  %1017 = vst.msk [vmem:[#allocation8 + $0x3c] sm:$0xf] %vm583_vm1, %v1244_v27  ;;  %v873_v14 = vmul.f32 %v1436_v50, %v1963_v54 }
 0x1f8   :  { %1049 = vst.msk [vmem:[#allocation8 + $0x3c] sm:$0xf] %vm616_vm2, %v1562_v3  ;;  %v872_v34 = vmul.f32 %v1438_v62, %v1965_v55 }
 0x1f9   :  { %1016 = vst.msk [vmem:[#allocation8 + $0x38] sm:$0xf] %vm583_vm1, %v1243_v10  ;;  %v1260_v37 = vpack.c.bf16 %v873_v14, %v873_v14 }
 0x1fa   :  { %1048 = vst.msk [vmem:[#allocation8 + $0x38] sm:$0xf] %vm616_vm2, %v1562_v3  ;;  %v1259_v15 = vpack.c.bf16 %v872_v34, %v872_v34 }
 0x1fb   :  { %1033 = vst.msk [vmem:[#allocation8 + $0x7c] sm:$0xf] %vm583_vm1, %v1260_v37 }
 0x1fc   :  { %1065 = vst.msk [vmem:[#allocation8 + $0x7c] sm:$0xf] %vm616_vm2, %v1562_v3 }
 0x1fd   :  { %1032 = vst.msk [vmem:[#allocation8 + $0x78] sm:$0xf] %vm583_vm1, %v1259_v15 }
 0x1fe   :  { %1064 = vst.msk [vmem:[#allocation8 + $0x78] sm:$0xf] %vm616_vm2, %v1562_v3 }
 0x1ff   :  { %1538 = shalt.err (!%p1535_p8)
}
 0x200   :  { %s1539_s16 = scalar_lea.hbm %s2182_s3, 2048 }
 0x201   :  { %p1540_p9 = scmp.ne.s32.totalorder %s2182_s3, %s1539_s16  ;;  %p1543_p10 = scmp.lt.u32.totalorder %s1539_s16, %s2182_s3 }
 0x203   :  { %p1545_p11 = pnand %p1543_p10, %p1540_p9 }
 0x205   :  { %1548 = shalt.err (!%p1545_p11)
}
 0x206   :  { %1077 = dma.vmem_to_hbm [thread:$0]  %s1072_s1, 2048, %s2182_s3, [#allocation4], %s1564_s9, %s1564_s9, %s1565_s10  }
 0x207   :  { %1553 = dma.done.wait [#allocation4], 2048  }
 0x208   :  { %1554 = vsyncadd [#allocation4], 4294965248 }
 0x209   :  { %1555 = dma.done.wait [#allocation10], 2048  }
 0x20a   :  { %1556 = vsyncadd [#allocation10], 4294965248 }
 0x20b   :  { %1096 = vsyncpa [#allocation3], 1 }
 0x20c   :  { %1097 = vsyncpa [#allocation6], 1 }
 0x20d   :  { %1098 = vsyncpa [#allocation4], 1 }
 0x20e   :  { %1099 = vsyncpa [#allocation10], 1 }

</bundles_post_ra>
